<compile_context>
chip_gen: v7x
topology: tpu7x:2x2x1
jax: 0.10.0
libtpu: 0.0.40
codegen_flags: <defaults>
</compile_context>

<pallas_src>
import functools

import jax
import jax.numpy as jnp
from jax.experimental import pallas as pl
from jax.experimental.pallas import tpu as pltpu

LANES = 128
MAX_BLOCK_ROWS = 4096   # (4096, 128) f32 = 2 MiB per input per pipeline buffer
NUM_CORES = 2           # v7x: 2 TCs/chip. Sequential (negligible) on v5e/v6e.


def _tversky_partial_kernel(x_ref, t_ref, o_ref, *, n_valid, blocks_per_core,
                            block_rows, apply_mask):
    c = pl.program_id(0)   # core (parallel) axis
    i = pl.program_id(1)   # reduction (arbitrary) axis

    @pl.when(i == 0)
    def _():
        o_ref[...] = jnp.zeros_like(o_ref)

    x = x_ref[...].astype(jnp.float32)
    t = t_ref[...].astype(jnp.float32)

    # sigmoid(x) as a single EUP transcendental per element.
    p = 0.5 * jnp.tanh(0.5 * x) + 0.5

    def accumulate(pv, tv):
        # Lane-wise partial sums only (VALU vreg tree + one sublane reduce);
        # the single cross-lane reduction happens once, outside the kernel.
        o_ref[0, 0, :] += jnp.sum(pv, axis=0)
        o_ref[0, 1, :] += jnp.sum(tv, axis=0)
        o_ref[0, 2, :] += jnp.sum(pv * tv, axis=0)

    if apply_mask:
        blk = c * blocks_per_core + i                 # logical (unclamped) block id
        n_full = n_valid // (block_rows * LANES)      # count of 100%-valid blocks

        @pl.when(blk < n_full)
        def _():
            accumulate(p, t)                          # fast path, no mask

        @pl.when(blk >= n_full)
        def _():
            row = jax.lax.broadcasted_iota(jnp.int32, p.shape, 0) + blk * block_rows
            lane = jax.lax.broadcasted_iota(jnp.int32, p.shape, 1)
            valid = row * LANES + lane < n_valid
            accumulate(jnp.where(valid, p, 0.0), jnp.where(valid, t, 0.0))
    else:
        accumulate(p, t)


def tversky_loss(inputs, targets, smooth=1.0, alpha=0.5, beta=0.5):
    """Pallas TPU implementation of TverskyLoss.forward. Returns a scalar f32."""
    x = jnp.reshape(inputs, (-1,))
    t = jnp.reshape(targets, (-1,))
    n = int(x.shape[0])

    # Lane-dense 2-D slab. Zero-copy reshape when n % 128 == 0 (the common
    # segmentation case); otherwise pad minimally -- padded contents are
    # masked in-kernel so their values never matter.
    pad = (-n) % LANES
    if pad:
        x = jnp.pad(x, (0, pad))
        t = jnp.pad(t, (0, pad))
    rows = (n + pad) // LANES
    x2 = x.reshape(rows, LANES)
    t2 = t.reshape(rows, LANES)

    block_rows = MAX_BLOCK_ROWS if rows >= MAX_BLOCK_ROWS else rows
    num_blocks = pl.cdiv(rows, block_rows)
    blocks_per_core = pl.cdiv(num_blocks, NUM_CORES)
    apply_mask = (NUM_CORES * blocks_per_core * block_rows * LANES) != n

    def in_map(c, i):
        # Clamp so over-provisioned grid steps re-read the last valid block;
        # their contributions are fully masked out in the kernel.
        return (jnp.minimum(c * blocks_per_core + i, num_blocks - 1), 0)

    kernel = functools.partial(
        _tversky_partial_kernel,
        n_valid=int(n),
        blocks_per_core=int(blocks_per_core),
        block_rows=int(block_rows),
        apply_mask=bool(apply_mask),
    )

    # Per-core partial sums: rows 0..2 of each (8,128) slab hold lane-wise
    # [sum_p, sum_t, sum_pt]; rows 3..7 stay zero (kept for clean (8,128) tiling).
    partials = pl.pallas_call(
        kernel,
        out_shape=jax.ShapeDtypeStruct((NUM_CORES, 8, LANES), jnp.float32),
        grid_spec=pltpu.PrefetchScalarGridSpec(
            num_scalar_prefetch=0,
            grid=(NUM_CORES, int(blocks_per_core)),
            in_specs=[
                pl.BlockSpec((block_rows, LANES), in_map),
                pl.BlockSpec((block_rows, LANES), in_map),
            ],
            out_specs=pl.BlockSpec((1, 8, LANES), lambda c, i: (c, 0, 0)),
        ),
        compiler_params=pltpu.CompilerParams(
            dimension_semantics=("parallel", "arbitrary"),
            vmem_limit_bytes=32 * 1024 * 1024,
        ),
    )(x2, t2)

    sums = jnp.sum(partials, axis=(0, 2))     # (8,), rows 3..7 are zero
    sum_p, sum_t, tp = sums[0], sums[1], sums[2]
    fp = sum_p - tp                           # sum((1 - t) * p)
    fn = sum_t - tp                           # sum(t * (1 - p))
    tversky = (tp + smooth) / (tp + alpha * fp + beta * fn + smooth)
    return 1.0 - tversky


def tversky_loss_ref(inputs, targets, smooth=1.0, alpha=0.5, beta=0.5):
    p = jax.nn.sigmoid(inputs.astype(jnp.float32)).reshape(-1)
    t = targets.astype(jnp.float32).reshape(-1)
    TP = jnp.sum(p * t)
    FP = jnp.sum((1.0 - t) * p)
    FN = jnp.sum(t * (1.0 - p))
    return 1.0 - (TP + smooth) / (TP + alpha * FP + beta * FN + smooth)


if __name__ == "__main__":
    root = jax.random.PRNGKey(0)

    # (shape, atol): small exact-fit NCHW case, a tiny ragged case (exercises
    # host padding + in-kernel tail masking), and a moderate case that hits
    # multi-block-per-core accumulation, block clamping and partial-block masks.
    cases = [
        ((2, 4, 16, 16), 1e-4),
        ((3, 5, 7, 9), 1e-4),
        ((2, 4, 384, 384), 1e-3),
    ]
    for idx, (shape, atol) in enumerate(cases):
        k1, k2 = jax.random.split(jax.random.fold_in(root, idx))
        x = jax.random.normal(k1, shape, dtype=jnp.float32)
        t = (jax.random.uniform(k2, shape) > 0.5).astype(jnp.float32)

        loss = jax.block_until_ready(tversky_loss(x, t))
        ref = jax.block_until_ready(tversky_loss_ref(x, t))
        assert jnp.allclose(loss, ref, atol=atol, rtol=atol), (shape, loss, ref)

    print("KERNEL_OK")
</pallas_src>

<mosaic_0001>
module attributes {stable_mosaic.version = 11 : i64} {
  func.func @_tversky_partial_kernel(%arg0: i32, %arg1: i32, %arg2: memref<16x128xf32, #tpu.memory_space<vmem>>, %arg3: memref<16x128xf32, #tpu.memory_space<vmem>>, %arg4: memref<1x8x128xf32, #tpu.memory_space<vmem>>) attributes {dimension_semantics = [#tpu.dimension_semantics<parallel>, #tpu.dimension_semantics<arbitrary>], iteration_bounds = array<i64: 2, 1>, scalar_prefetch = 0 : i64, scratch_operands = 0 : i64, tpu.core_type = #tpu.core_type<tc>, window_params = [{transform_indices = @transform_0, window_bounds = array<i64: 16, 128>}, {transform_indices = @transform_1, window_bounds = array<i64: 16, 128>}, {transform_indices = @transform_2, window_bounds = array<i64: 1, 8, 128>}]} {
    %c0_i32 = arith.constant 0 : i32
    %0 = arith.cmpi eq, %arg1, %c0_i32 : i32
    %1 = arith.extui %0 : i1 to i32
    %c0_i32_0 = arith.constant 0 : i32
    %2 = arith.cmpi ne, %1, %c0_i32_0 : i32
    scf.if %2 {
      %cst_10 = arith.constant 0.000000e+00 : f32
      %20 = vector.broadcast %cst_10 : f32 to vector<1x8x128xf32>
      %c0_11 = arith.constant 0 : index
      %c0_12 = arith.constant 0 : index
      %c0_13 = arith.constant 0 : index
      %21 = vector.load %arg4[%c0_11, %c0_12, %c0_13] : memref<1x8x128xf32, #tpu.memory_space<vmem>>, vector<1x8x128xf32>
      tpu.vector_store %arg4[%c0_11, %c0_12, %c0_13], %20 {strides = array<i32>} : memref<1x8x128xf32, #tpu.memory_space<vmem>>, vector<1x8x128xf32>,
    } else {
    }
    %c0 = arith.constant 0 : index
    %c0_1 = arith.constant 0 : index
    %3 = vector.load %arg2[%c0, %c0_1] : memref<16x128xf32, #tpu.memory_space<vmem>>, vector<16x128xf32>
    %c0_2 = arith.constant 0 : index
    %c0_3 = arith.constant 0 : index
    %4 = vector.load %arg3[%c0_2, %c0_3] : memref<16x128xf32, #tpu.memory_space<vmem>>, vector<16x128xf32>
    %cst = arith.constant 5.000000e-01 : f32
    %5 = vector.broadcast %cst : f32 to vector<16x128xf32>
    %6 = arith.mulf %5, %3 : vector<16x128xf32>
    %7 = math.tanh %6 : vector<16x128xf32>
    %cst_4 = arith.constant 5.000000e-01 : f32
    %8 = vector.broadcast %cst_4 : f32 to vector<16x128xf32>
    %9 = arith.mulf %8, %7 : vector<16x128xf32>
    %cst_5 = arith.constant 5.000000e-01 : f32
    %10 = vector.broadcast %cst_5 : f32 to vector<16x128xf32>
    %11 = arith.addf %9, %10 : vector<16x128xf32>
    %c1_i32 = arith.constant 1 : i32
    %12 = arith.muli %arg0, %c1_i32 : i32
    %13 = arith.addi %12, %arg1 : i32
    %c1_i32_6 = arith.constant 1 : i32
    %14 = arith.cmpi slt, %13, %c1_i32_6 : i32
    %15 = arith.extui %14 : i1 to i32
    %c0_i32_7 = arith.constant 0 : i32
    %16 = arith.cmpi ne, %15, %c0_i32_7 : i32
    scf.if %16 {
      %c0_10 = arith.constant 0 : index
      %c0_11 = arith.constant 0 : index
      %c0_12 = arith.constant 0 : index
      %20 = vector.load %arg4[%c0_10, %c0_11, %c0_12] : memref<1x8x128xf32, #tpu.memory_space<vmem>>, vector<1x1x128xf32>
      %21 = vector.shape_cast %20 : vector<1x1x128xf32> to vector<128xf32>
      %cst_13 = arith.constant dense<0.000000e+00> : vector<128xf32>
      %22 = vector.multi_reduction <add>, %11, %cst_13 [0] : vector<16x128xf32> to vector<128xf32>
      %23 = arith.addf %21, %22 : vector<128xf32>
      %c0_14 = arith.constant 0 : index
      %c0_15 = arith.constant 0 : index
      %c0_16 = arith.constant 0 : index
      %24 = vector.load %arg4[%c0_14, %c0_15, %c0_16] : memref<1x8x128xf32, #tpu.memory_space<vmem>>, vector<1x1x128xf32>
      %25 = vector.shape_cast %24 : vector<1x1x128xf32> to vector<128xf32>
      %26 = vector.shape_cast %23 : vector<128xf32> to vector<1x1x128xf32>
      tpu.vector_store %arg4[%c0_14, %c0_15, %c0_16], %26 {strides = array<i32>} : memref<1x8x128xf32, #tpu.memory_space<vmem>>, vector<1x1x128xf32>,
      %c0_17 = arith.constant 0 : index
      %c1 = arith.constant 1 : index
      %c0_18 = arith.constant 0 : index
      %27 = vector.load %arg4[%c0_17, %c1, %c0_18] : memref<1x8x128xf32, #tpu.memory_space<vmem>>, vector<1x1x128xf32>
      %28 = vector.shape_cast %27 : vector<1x1x128xf32> to vector<128xf32>
      %cst_19 = arith.constant dense<0.000000e+00> : vector<128xf32>
      %29 = vector.multi_reduction <add>, %4, %cst_19 [0] : vector<16x128xf32> to vector<128xf32>
      %30 = arith.addf %28, %29 : vector<128xf32>
      %c0_20 = arith.constant 0 : index
      %c1_21 = arith.constant 1 : index
      %c0_22 = arith.constant 0 : index
      %31 = vector.load %arg4[%c0_20, %c1_21, %c0_22] : memref<1x8x128xf32, #tpu.memory_space<vmem>>, vector<1x1x128xf32>
      %32 = vector.shape_cast %31 : vector<1x1x128xf32> to vector<128xf32>
      %33 = vector.shape_cast %30 : vector<128xf32> to vector<1x1x128xf32>
      tpu.vector_store %arg4[%c0_20, %c1_21, %c0_22], %33 {strides = array<i32>} : memref<1x8x128xf32, #tpu.memory_space<vmem>>, vector<1x1x128xf32>,
      %c0_23 = arith.constant 0 : index
      %c2 = arith.constant 2 : index
      %c0_24 = arith.constant 0 : index
      %34 = vector.load %arg4[%c0_23, %c2, %c0_24] : memref<1x8x128xf32, #tpu.memory_space<vmem>>, vector<1x1x128xf32>
      %35 = vector.shape_cast %34 : vector<1x1x128xf32> to vector<128xf32>
      %36 = arith.mulf %11, %4 : vector<16x128xf32>
      %cst_25 = arith.constant dense<0.000000e+00> : vector<128xf32>
      %37 = vector.multi_reduction <add>, %36, %cst_25 [0] : vector<16x128xf32> to vector<128xf32>
      %38 = arith.addf %35, %37 : vector<128xf32>
      %c0_26 = arith.constant 0 : index
      %c2_27 = arith.constant 2 : index
      %c0_28 = arith.constant 0 : index
      %39 = vector.load %arg4[%c0_26, %c2_27, %c0_28] : memref<1x8x128xf32, #tpu.memory_space<vmem>>, vector<1x1x128xf32>
      %40 = vector.shape_cast %39 : vector<1x1x128xf32> to vector<128xf32>
      %41 = vector.shape_cast %38 : vector<128xf32> to vector<1x1x128xf32>
      tpu.vector_store %arg4[%c0_26, %c2_27, %c0_28], %41 {strides = array<i32>} : memref<1x8x128xf32, #tpu.memory_space<vmem>>, vector<1x1x128xf32>,
    } else {
    }
    %c1_i32_8 = arith.constant 1 : i32
    %17 = arith.cmpi sge, %13, %c1_i32_8 : i32
    %18 = arith.extui %17 : i1 to i32
    %c0_i32_9 = arith.constant 0 : i32
    %19 = arith.cmpi ne, %18, %c0_i32_9 : i32
    scf.if %19 {
      %20 = tpu.iota {dimensions = array<i32: 0>} : vector<16x128xi32>
      %c16_i32 = arith.constant 16 : i32
      %21 = arith.muli %13, %c16_i32 : i32
      %22 = vector.broadcast %21 : i32 to vector<16x128xi32>
      %23 = arith.addi %20, %22 : vector<16x128xi32>
      %24 = tpu.iota {dimensions = array<i32: 1>} : vector<16x128xi32>
      %c128_i32 = arith.constant 128 : i32
      %25 = vector.broadcast %c128_i32 : i32 to vector<16x128xi32>
      %26 = arith.muli %23, %25 : vector<16x128xi32>
      %27 = arith.addi %26, %24 : vector<16x128xi32>
      %c2048_i32 = arith.constant 2048 : i32
      %28 = vector.broadcast %c2048_i32 : i32 to vector<16x128xi32>
      %29 = arith.cmpi slt, %27, %28 : vector<16x128xi32>
      %cst_10 = arith.constant 0.000000e+00 : f32
      %30 = vector.broadcast %cst_10 : f32 to vector<16x128xf32>
      %31 = arith.select %29, %11, %30 : vector<16x128xi1>, vector<16x128xf32>
      %cst_11 = arith.constant 0.000000e+00 : f32
      %32 = vector.broadcast %cst_11 : f32 to vector<16x128xf32>
      %33 = arith.select %29, %4, %32 : vector<16x128xi1>, vector<16x128xf32>
      %c0_12 = arith.constant 0 : index
      %c0_13 = arith.constant 0 : index
      %c0_14 = arith.constant 0 : index
      %34 = vector.load %arg4[%c0_12, %c0_13, %c0_14] : memref<1x8x128xf32, #tpu.memory_space<vmem>>, vector<1x1x128xf32>
      %35 = vector.shape_cast %34 : vector<1x1x128xf32> to vector<128xf32>
      %cst_15 = arith.constant dense<0.000000e+00> : vector<128xf32>
      %36 = vector.multi_reduction <add>, %31, %cst_15 [0] : vector<16x128xf32> to vector<128xf32>
      %37 = arith.addf %35, %36 : vector<128xf32>
      %c0_16 = arith.constant 0 : index
      %c0_17 = arith.constant 0 : index
      %c0_18 = arith.constant 0 : index
      %38 = vector.load %arg4[%c0_16, %c0_17, %c0_18] : memref<1x8x128xf32, #tpu.memory_space<vmem>>, vector<1x1x128xf32>
      %39 = vector.shape_cast %38 : vector<1x1x128xf32> to vector<128xf32>
      %40 = vector.shape_cast %37 : vector<128xf32> to vector<1x1x128xf32>
      tpu.vector_store %arg4[%c0_16, %c0_17, %c0_18], %40 {strides = array<i32>} : memref<1x8x128xf32, #tpu.memory_space<vmem>>, vector<1x1x128xf32>,
      %c0_19 = arith.constant 0 : index
      %c1 = arith.constant 1 : index
      %c0_20 = arith.constant 0 : index
      %41 = vector.load %arg4[%c0_19, %c1, %c0_20] : memref<1x8x128xf32, #tpu.memory_space<vmem>>, vector<1x1x128xf32>
      %42 = vector.shape_cast %41 : vector<1x1x128xf32> to vector<128xf32>
      %cst_21 = arith.constant dense<0.000000e+00> : vector<128xf32>
      %43 = vector.multi_reduction <add>, %33, %cst_21 [0] : vector<16x128xf32> to vector<128xf32>
      %44 = arith.addf %42, %43 : vector<128xf32>
      %c0_22 = arith.constant 0 : index
      %c1_23 = arith.constant 1 : index
      %c0_24 = arith.constant 0 : index
      %45 = vector.load %arg4[%c0_22, %c1_23, %c0_24] : memref<1x8x128xf32, #tpu.memory_space<vmem>>, vector<1x1x128xf32>
      %46 = vector.shape_cast %45 : vector<1x1x128xf32> to vector<128xf32>
      %47 = vector.shape_cast %44 : vector<128xf32> to vector<1x1x128xf32>
      tpu.vector_store %arg4[%c0_22, %c1_23, %c0_24], %47 {strides = array<i32>} : memref<1x8x128xf32, #tpu.memory_space<vmem>>, vector<1x1x128xf32>,
      %c0_25 = arith.constant 0 : index
      %c2 = arith.constant 2 : index
      %c0_26 = arith.constant 0 : index
      %48 = vector.load %arg4[%c0_25, %c2, %c0_26] : memref<1x8x128xf32, #tpu.memory_space<vmem>>, vector<1x1x128xf32>
      %49 = vector.shape_cast %48 : vector<1x1x128xf32> to vector<128xf32>
      %50 = arith.mulf %31, %33 : vector<16x128xf32>
      %cst_27 = arith.constant dense<0.000000e+00> : vector<128xf32>
      %51 = vector.multi_reduction <add>, %50, %cst_27 [0] : vector<16x128xf32> to vector<128xf32>
      %52 = arith.addf %49, %51 : vector<128xf32>
      %c0_28 = arith.constant 0 : index
      %c2_29 = arith.constant 2 : index
      %c0_30 = arith.constant 0 : index
      %53 = vector.load %arg4[%c0_28, %c2_29, %c0_30] : memref<1x8x128xf32, #tpu.memory_space<vmem>>, vector<1x1x128xf32>
      %54 = vector.shape_cast %53 : vector<1x1x128xf32> to vector<128xf32>
      %55 = vector.shape_cast %52 : vector<128xf32> to vector<1x1x128xf32>
      tpu.vector_store %arg4[%c0_28, %c2_29, %c0_30], %55 {strides = array<i32>} : memref<1x8x128xf32, #tpu.memory_space<vmem>>, vector<1x1x128xf32>,
    } else {
    }
    return
  }
  func.func @transform_0(%arg0: i32, %arg1: i32) -> (i32, i32) {
    %c1_i32 = arith.constant 1 : i32
    %0 = arith.muli %arg0, %c1_i32 : i32
    %1 = arith.addi %0, %arg1 : i32
    %c0_i32 = arith.constant 0 : i32
    %2 = arith.minsi %1, %c0_i32 : i32
    %c0_i32_0 = arith.constant 0 : i32
    %c0_i32_1 = arith.constant 0 : i32
    return %2, %c0_i32_0 : i32, i32
  }
  func.func @transform_1(%arg0: i32, %arg1: i32) -> (i32, i32) {
    %c1_i32 = arith.constant 1 : i32
    %0 = arith.muli %arg0, %c1_i32 : i32
    %1 = arith.addi %0, %arg1 : i32
    %c0_i32 = arith.constant 0 : i32
    %2 = arith.minsi %1, %c0_i32 : i32
    %c0_i32_0 = arith.constant 0 : i32
    %c0_i32_1 = arith.constant 0 : i32
    return %2, %c0_i32_0 : i32, i32
  }
  func.func @transform_2(%arg0: i32, %arg1: i32) -> (i32, i32, i32) {
    %c0_i32 = arith.constant 0 : i32
    %c0_i32_0 = arith.constant 0 : i32
    %c0_i32_1 = arith.constant 0 : i32
    return %arg0, %c0_i32, %c0_i32_0 : i32, i32, i32
  }
}

</mosaic_0001>

<bundles_post_ra>
// kernel: tpu_custom_call.1
= control target key start
LH: loop header
LB: loop body
LE: loop exit
PB: predicated region body
PF: predicated region fallthrough
CT: control target
= control target key end

     0   :  { %7 = vsyncpa [#allocation3], 0  ;;  %s1005_s0 = inlined_call_operand.hbm [shape: f32[16,128], index: 0, kind: input, shape index: {}]   ;;  %s1006_s1 = inlined_call_operand.hbm [shape: f32[16,128], index: 1, kind: input, shape index: {}]   ;;  %s1007_s2 = inlined_call_operand.hbm [shape: f32[2,8,128], index: 2, kind: output, shape index: {}]  }
   0x1   :  { %9 = vsyncpa [#allocation3 + $0x1], 0 }
   0x2   :  { %10 = vsyncpa [#allocation6], 0 }
   0x3   :  { %12 = vsyncpa [#allocation6 + $0x1], 0 }
   0x4   :  { %13 = vsyncpa [#allocation4], 0 }
   0x5   :  { %15 = vsyncpa [#allocation4 + $0x1], 0  ;;  %s775_s9 = smov 0   ;;  %s777_s10 = smov 0  }
   0x6   :  { %s779_s11 = smov 0   ;;  %s781_s12 = smov 0  }
   0x7   :  { %s783_s13 = smov 0   ;;  %s785_s14 = smov 0  }
   0x8   :  { %s787_s15 = smov 0   ;;  %s789_s16 = smov 0  }
   0x9 LB: > { %s464_s17 = sadd.s32 4294967295, %s752_s16   ;;  %s465_s18 = sadd.s32 4294967294, %s752_s16   ;;  %s752_s16 = sphi %s789_s16, %s21_s16   ;;  %s748_s15 = sphi %s787_s15, %s1026_s15   ;;  %s744_s14 = sphi %s785_s14, %s1025_s14   ;;  %s740_s13 = sphi %s783_s13, %s995_s13   ;;  %s736_s12 = sphi %s781_s12, %s1024_s12   ;;  %s732_s11 = sphi %s779_s11, %s1023_s11   ;;  %s728_s10 = sphi %s777_s10, %s1022_s10   ;;  %s724_s9 = sphi %s775_s9, %s1021_s9  }
   0xa   : > { %s33_s19 = sadd.s32 1, %s748_s15  ;;  %p721_p1 = scmp.ne.s32.totalorder %s740_s13, 0 }
   0xb   : > { %p35_p0 = scmp.ge.s32.totalorder %s33_s19, 2  ;;  %p54_p2 = scmp.eq.s32.totalorder %s752_s16, 0 }
   0xc   : > { %p59_p3 = scmp.ne.s32.totalorder %s740_s13, %s736_s12  ;;  %p60_p5 = scmp.eq.s32.totalorder %s464_s17, 0 }
   0xd   : > { %s1028_s19 = smov (%p35_p0, %s33_s19), 0  ;;  %p821_p4 = por %p721_p1, %p54_p2 }
   0xe   : > { %p825_p6 = por %p60_p5, %p59_p3  ;;  %s101_s22 = ssub.s32 %s748_s15, %s1028_s19 }
   0xf   : > { %p102_p7 = scmp.eq.s32.totalorder %s101_s22, 0  ;;  %s104_s23 = sadd.s32 1, %s732_s11 }
  0x10   : > { %s1011_s21 = scalar_select %p825_p6, 1, 0 }
  0x11   : > { %s833_s24 = scalar_select %p102_p7, %s732_s11, %s104_s23  }
  0x12   : > { %p114_p8 = scmp.ne.s32.totalorder %s732_s11, %s728_s10  ;;  %p115_p9 = scmp.eq.s32.totalorder %s464_s17, 1 }
  0x13   : > { %p120_p10 = scmp.ne.s32.totalorder %s728_s10, %s724_s9  ;;  %p121_p11 = scmp.eq.s32.totalorder %s465_s18, 1 }
  0x14   : > { %p839_p12 = por %p115_p9, %p114_p8  ;;  %p504_p1 = scmp.lt.s32.totalorder %s752_s16, 2 }
  0x15   : > { %p844_p0 = por %p121_p11, %p120_p10  ;;  %s754_s27 = smov [#allocation2]  }
  0x16   : > { %s1012_s25 = scalar_select %p839_p12, 1, 0 }
  0x17   : > { %s1013_s26 = scalar_select %p844_p0, 1, 0 }
  0x18   : > { %s155_s28 = sshll.u32 %s754_s27, 4  ;;  %p851_p2 = pnand %p504_p1, %p821_p4  ;;  %s156_s28 = int_to_ptr.vmem [resolvable:$true] %s155_s28 }
  0x19   : > { %s585_s4 = scalar_lea.hbm %s1005_s0, 256 }
  0x1a   : > { %p586_p3 = scmp.ne.s32.totalorder %s1005_s0, %s585_s4  ;;  %p587_p5 = pneg %p851_p2 }
  0x1b   : > { %p592_p8 = scmp.lt.u32.totalorder %s585_s4, %s585_s4  ;;  %p594_p9 = scmp.lt.u32.totalorder %s585_s4, %s1005_s0 }
  0x1c   : > { %p588_p7 = pnand %p587_p5, %p586_p3 }
  0x1d   : > { %p595_p10 = por %p594_p9, %p592_p8 }
  0x1e   : > { %p589_p4 = pneg %p588_p7 }
  0x20   : > { %p596_p11 = pnand %p595_p10, %p589_p4 }
  0x22   : > { %599 = shalt.err (!%p596_p11)
}
  0x23   : > { %s600_s12 = scalar_lea.vmem %s156_s28, 256  ;;  %s607_s17 = scalar_lea.vmem %s156_s28, 512 }
  0x24   : > { %p601_p1 = scmp.ne.s32.totalorder %s156_s28, %s600_s12  ;;  %p608_p12 = scmp.lt.s32.totalorder %s156_s28, %s156_s28 }
  0x25   : > { %p609_p6 = scmp.lt.s32.totalorder %s607_s17, %s600_s12 }
  0x26   : > { %p603_p13 = pnand %p601_p1, %p587_p5 }
  0x27   : > { %p610_p3 = por %p609_p6, %p608_p12 }
  0x28   : > { %p604_p0 = pneg %p603_p13 }
  0x2a   : > { %p611_p7 = pnand %p610_p3, %p604_p0 }
  0x2c   : > { %614 = shalt.err (!%p611_p7)
}
  0x2d   : > { %s755_s18 = smov 128   ;;  %s756_s20 = smov 8  }
  0x2e   : > { %496 = dma.hbm_to_vmem [thread:$0]  (!%p851_p2), %s1005_s0, 256, %s156_s28, [#allocation3], %s755_s18, %s755_s18, %s756_s20  }
  0x2f   : > { %p474_p13 = scmp.ge.s32.totalorder %s752_s16, 1  ;;  %p187_p4 = scmp.lt.s32.totalorder %s752_s16, 3 }
  0x30   : > { %s757_s30 = smov [#allocation5]   ;;  %s615_s6 = scalar_lea.hbm %s1006_s1, 256 }
  0x31   : > { %p882_p8 = pnand %p474_p13, %p187_p4  ;;  %s179_s3 = sshll.u32 %s757_s30, 4  ;;  %s180_s3 = int_to_ptr.vmem [resolvable:$true] %s179_s3 }
  0x32   : > { %p616_p6 = scmp.ne.s32.totalorder %s1006_s1, %s615_s6  ;;  %p622_p9 = scmp.lt.u32.totalorder %s615_s6, %s615_s6 }
  0x33   : > { %s1015_s27 = scalar_select %p882_p8, 1, 0 }
  0x34   : > { %p618_p12 = pnand %p616_p6, %p587_p5  ;;  %p624_p10 = scmp.lt.u32.totalorder %s615_s6, %s1006_s1 }
  0x36   : > { %p619_p0 = pneg %p618_p12  ;;  %p625_p11 = por %p624_p10, %p622_p9 }
  0x38   : > { %p626_p1 = pnand %p625_p11, %p619_p0 }
  0x3a   : > { %629 = shalt.err (!%p626_p1)
}
  0x3b   : > { %s630_s17 = scalar_lea.vmem %s180_s3, 256  ;;  %s637_s22 = scalar_lea.vmem %s180_s3, 512 }
  0x3c   : > { %p631_p3 = scmp.ne.s32.totalorder %s180_s3, %s630_s17  ;;  %p638_p4 = scmp.lt.s32.totalorder %s180_s3, %s180_s3 }
  0x3d   : > { %p639_p8 = scmp.lt.s32.totalorder %s637_s22, %s630_s17 }
  0x3e   : > { %p633_p7 = pnand %p631_p3, %p587_p5 }
  0x3f   : > { %p640_p6 = por %p639_p8, %p638_p4 }
  0x40   : > { %p634_p13 = pneg %p633_p7 }
  0x42   : > { %p641_p12 = pnand %p640_p6, %p634_p13 }
  0x44   : > { %644 = shalt.err (!%p641_p12)
}
  0x45   : > { %499 = dma.hbm_to_vmem [thread:$0]  (!%p851_p2), %s1006_s1, 256, %s180_s3, [#allocation6], %s755_s18, %s755_s18, %s756_s20  }
  0x46   : > { %p1016_p0 = scmp.ne.s32.totalorder %s1015_s27, 0 }
  0x47   : > { %s193_s4 = sand.u32 (!%p1016_p0), 1, %s740_s13   ;;  %p1017_p5 = scmp.ne.s32.totalorder (!%p1016_p0), %s1011_s21, 0 }
  0x48   : > { %191 = sbr.rel (%p1016_p0) target bundleno = 179 (0xb3), region = 28  ;;  %s475_s5 = sshll.u32 (!%p1016_p0), %s193_s4, 4 }
  0x49   : > { %s194_s6 = scalar_lea.sflag (!%p1016_p0), [#allocation3], %s193_s4  ;;  %s197_s7 = scalar_lea.vmem (!%p1016_p0), [#allocation2], %s475_s5 }
  0x4f   : > { %710 = dma.done.wait (%p1017_p5), %s194_s6, 256  }
  0x50   : > { %712 = vsyncadd (%p1017_p5), %s194_s6, 4294967040  ;;  %s203_s29 = scalar_lea.sflag [#allocation6], %s193_s4  ;;  %s206_s8 = scalar_lea.vmem [#allocation5], %s475_s5 }
  0x51   : > { %714 = dma.done.wait (%p1017_p5), %s203_s29, 256  }
  0x52   : > { %716 = vsyncadd (%p1017_p5), %s203_s29, 4294967040  ;;  %s229_s18 = sand.u32 1, %s728_s10   ;;  %v758_v0 = vmov 0.0   ;;  %v245_v1 = vld [vmem:[%s197_s7] sm:$0xff]  ;;  %v246_v2 = vld [vmem:[%s197_s7 + $0x8] sm:$0xff]  ;;  %p478_p2 = scmp.ge.s32.totalorder %s744_s14, 1 }
  0x53   : > { %s477_s20 = sshll.u32 %s229_s18, 3  ;;  %v926_v3 = vld [vmem:[%s206_s8] sm:$0xff]  ;;  %v928_v4 = vld [vmem:[%s206_s8 + $0x8] sm:$0xff]  ;;  %v249_v5 = vmul.f32 0.5, %v245_v1  ;;  %v250_v6 = vmul.f32 0.5, %v246_v2 }
  0x54   : > { %s923_s27 = scalar_lea.vmem [#allocation7], %s477_s20  ;;  %v273_v14 = vadd.f32 (!%p478_p2), %v928_v4, %v926_v3 }
  0x55   : > { %244 = vst [vmem:[%s923_s27] sm:$0xff] %v758_v0  ;;  %581 = vtanh.f32 %v249_v5 }
  0x56   : > { %583 = vtanh.f32 %v250_v6  ;;  %v274_v18 = vrot.slane (!%p478_p2), %v273_v14, 4 }
  0x58   : > { %v275_v21 = vadd.f32 (!%p478_p2), %v274_v18, %v273_v14 }
  0x5a   : > { %v276_v24 = vrot.slane (!%p478_p2), %v275_v21, 2 }
  0x5c   : > { %v277_v27 = vadd.f32 (!%p478_p2), %v276_v24, %v275_v21  ;;  %v262_v32 = vld [vmem:[%s923_s27] sm:$0x1] (!%p478_p2)  ;;  %v272_v33 = vld [vmem:[%s923_s27 + $0x1] sm:$0x1] (!%p478_p2)  ;;  %v282_v37 = vld [vmem:[%s923_s27 + $0x2] sm:$0x1] (!%p478_p2) }
  0x5d   : > { %261 = sbr.rel (%p478_p2) target bundleno = 120 (0x78), region = 44 }
  0x5e   : > { %v278_v30 = vrot.slane (!%p478_p2), %v277_v27, 1 }
  0x5f   : > { %v582_v7 = vpop.eup %581 }
  0x60   : > { %v584_v8 = vpop.eup %583  ;;  %v253_v9 = vmul.f32 0.5, %v582_v7  ;;  %v279_v35 = vadd.f32 (!%p478_p2), %v278_v30, %v277_v27 }
  0x61   : > { %v254_v10 = vmul.f32 0.5, %v584_v8 }
  0x62   : > { %v255_v11 = vadd.f32 0.5, %v253_v9  ;;  %v280_v39 = vadd.f32 (!%p478_p2), %v279_v35, %v272_v33 }
  0x63   : > { %v256_v12 = vadd.f32 0.5, %v254_v10 }
  0x64   : > { %v283_v15 = vmul.f32 %v255_v11, %v926_v3  ;;  %281 = vst [vmem:[%s923_s27 + $0x1] sm:$0x1] %v280_v39 }
  0x65   : > { %v263_v13 = vadd.f32 %v256_v12, %v255_v11  ;;  %v284_v16 = vmul.f32 %v256_v12, %v928_v4 }
  0x67   : > { %v264_v17 = vrot.slane %v263_v13, 4  ;;  %v285_v19 = vadd.f32 %v284_v16, %v283_v15 }
  0x69   : > { %v265_v20 = vadd.f32 %v264_v17, %v263_v13  ;;  %v286_v22 = vrot.slane %v285_v19, 4 }
  0x6b   : > { %v266_v23 = vrot.slane %v265_v20, 2  ;;  %v287_v25 = vadd.f32 %v286_v22, %v285_v19 }
  0x6d   : > { %v267_v26 = vadd.f32 %v266_v23, %v265_v20  ;;  %v288_v28 = vrot.slane %v287_v25, 2 }
  0x6f   : > { %v268_v29 = vrot.slane %v267_v26, 1  ;;  %v289_v31 = vadd.f32 %v288_v28, %v287_v25 }
  0x71   : > { %v269_v34 = vadd.f32 %v268_v29, %v267_v26  ;;  %v290_v36 = vrot.slane %v289_v31, 1 }
  0x73   : > { %v270_v38 = vadd.f32 %v269_v34, %v262_v32  ;;  %v291_v40 = vadd.f32 %v290_v36, %v289_v31 }
  0x75   : > { %271 = vst [vmem:[%s923_s27] sm:$0x1] %v270_v38  ;;  %v292_v41 = vadd.f32 %v291_v40, %v282_v37 }
  0x77   : > { %293 = vst [vmem:[%s923_s27 + $0x2] sm:$0x1] %v292_v41 }
  0x78 PF: > { %p479_p8 = scmp.lt.s32.totalorder %s744_s14, 1 }
  0x79   : > { %v298_v42 = vlaneseq (!%p479_p8)  ;;  %s480_s21 = sshll.u32 (!%p479_p8), %s744_s14, 4 }
  0x7a   : > { %297 = sbr.rel (%p479_p8) target bundleno = 154 (0x9a), region = 48  ;;  %v302_v43 = vstv (!%p479_p8), %s480_s21 }
  0x7b   : > { %v299_v44 = vshrl.u32 (!%p479_p8), %v298_v42, 7  ;;  %v306_v47 = vand.u32 (!%p479_p8), 127, %v298_v42 }
  0x7d   : > { %v300_v45 = vadd.s32 (!%p479_p8), 8, %v299_v44  ;;  %v303_v46 = vadd.s32 (!%p479_p8), %v302_v43, %v299_v44 }
  0x7e   : > { %v337_v17 = vld [vmem:[%s923_s27 + $0x2] sm:$0x1] (!%p479_p8) }
  0x7f   : > { %v304_v48 = vadd.s32 (!%p479_p8), %v302_v43, %v300_v45  ;;  %v307_v49 = vmul.u32 (!%p479_p8), 128, %v303_v46  ;;  %v327_v13 = vld [vmem:[%s923_s27 + $0x1] sm:$0x1] (!%p479_p8) }
  0x81   : > { %v308_v50 = vmul.u32 128, %v304_v48  ;;  %v309_v51 = vadd.s32 %v307_v49, %v306_v47 }
  0x83   : > { %v310_v52 = vadd.s32 %v308_v50, %v306_v47  ;;  %vm311_vm0 = vcmp.lt.s32.totalorder %v309_v51, 2048 }
  0x84   : > { %v313_v53 = vsel %vm311_vm0, %v255_v11, 0.0  ;;  %v315_v54 = vsel %vm311_vm0, %v926_v3, 0.0 }
  0x85   : > { %vm312_vm1 = vcmp.lt.s32.totalorder %v310_v52, 2048  ;;  %v338_v55 = vmul.f32 %v315_v54, %v313_v53 }
  0x86   : > { %v314_v56 = vsel %vm312_vm1, %v256_v12, 0.0  ;;  %v316_v57 = vsel %vm312_vm1, %v928_v4, 0.0  ;;  %v317_v12 = vld [vmem:[%s923_s27] sm:$0x1] }
  0x87   : > { %v318_v58 = vadd.f32 %v314_v56, %v313_v53  ;;  %v328_v59 = vadd.f32 %v316_v57, %v315_v54  ;;  %v339_v60 = vmul.f32 %v316_v57, %v314_v56 }
  0x89   : > { %v319_v61 = vrot.slane %v318_v58, 4  ;;  %v329_v62 = vrot.slane %v328_v59, 4  ;;  %v340_v63 = vadd.f32 %v339_v60, %v338_v55 }
  0x8b   : > { %v320_v0 = vadd.f32 %v319_v61, %v318_v58  ;;  %v330_v1 = vadd.f32 %v329_v62, %v328_v59  ;;  %v341_v2 = vrot.slane %v340_v63, 4 }
  0x8d   : > { %v321_v5 = vrot.slane %v320_v0, 2  ;;  %v331_v6 = vrot.slane %v330_v1, 2  ;;  %v342_v3 = vadd.f32 %v341_v2, %v340_v63 }
  0x8f   : > { %v322_v7 = vadd.f32 %v321_v5, %v320_v0  ;;  %v332_v8 = vadd.f32 %v331_v6, %v330_v1  ;;  %v343_v4 = vrot.slane %v342_v3, 2 }
  0x91   : > { %v323_v9 = vrot.slane %v322_v7, 1  ;;  %v333_v10 = vrot.slane %v332_v8, 1  ;;  %v344_v11 = vadd.f32 %v343_v4, %v342_v3 }
  0x93   : > { %v324_v14 = vadd.f32 %v323_v9, %v322_v7  ;;  %v334_v15 = vadd.f32 %v333_v10, %v332_v8  ;;  %v345_v16 = vrot.slane %v344_v11, 1 }
  0x95   : > { %v325_v18 = vadd.f32 %v324_v14, %v317_v12  ;;  %v335_v19 = vadd.f32 %v334_v15, %v327_v13  ;;  %v346_v20 = vadd.f32 %v345_v16, %v344_v11 }
  0x97   : > { %326 = vst [vmem:[%s923_s27] sm:$0x1] %v325_v18  ;;  %336 = vst [vmem:[%s923_s27 + $0x1] sm:$0x1] %v335_v19  ;;  %v347_v21 = vadd.f32 %v346_v20, %v337_v17 }
  0x99   : > { %348 = vst [vmem:[%s923_s27 + $0x2] sm:$0x1] %v347_v21 }
  0x9a PF: > { %s482_s3 = sshll.u32 %s744_s14, 7  ;;  %s363_s22 = sshll.u32 %s923_s27, 4  ;;  %s364_s22 = int_to_ptr.vmem [resolvable:$true] %s363_s22 }
  0x9b   : > { %s955_s17 = scalar_lea.hbm %s1007_s2, %s482_s3  ;;  %s350_s23 = scalar_lea.sflag [#allocation4], %s229_s18 }
  0x9c   : > { %s645_s30 = scalar_lea.vmem %s364_s22, 128  ;;  %p1018_p10 = scmp.ne.s32.totalorder %s1012_s25, 0 }
  0x9d   : > { %p646_p9 = scmp.ne.s32.totalorder %s364_s22, %s645_s30  ;;  %s759_s4 = smov [#allocation7]  }
  0x9e   : > { %s649_s5 = sshll.u32 %s759_s4, 4  ;;  %s650_s5 = int_to_ptr.vmem [resolvable:$false] %s649_s5 }
  0x9f   : > { %p647_p11 = pnand %p646_p9, %p1018_p10  ;;  %s651_s6 = scalar_lea.vmem %s650_s5, 256 }
  0xa0   : > { %p652_p3 = scmp.lt.s32.totalorder %s364_s22, %s650_s5  ;;  %p653_p7 = scmp.lt.s32.totalorder %s651_s6, %s645_s30 }
  0xa1   : > { %p648_p1 = pneg %p647_p11 }
  0xa2   : > { %p654_p13 = por %p653_p7, %p652_p3 }
  0xa4   : > { %p655_p4 = pnand %p654_p13, %p648_p1 }
  0xa6   : > { %658 = shalt.err (!%p655_p4)
}
  0xa7   : > { %s659_s14 = scalar_lea.hbm %s955_s17, 128  ;;  %s663_s8 = scalar_lea.hbm %s1007_s2, 256 }
  0xa8   : > { %p660_p6 = scmp.ne.s32.totalorder %s955_s17, %s659_s14  ;;  %p664_p5 = scmp.lt.u32.totalorder %s955_s17, %s1007_s2 }
  0xa9   : > { %p665_p2 = scmp.lt.u32.totalorder %s663_s8, %s659_s14  ;;  %p667_p9 = scmp.lt.u32.totalorder %s659_s14, %s955_s17 }
  0xaa   : > { %p661_p12 = pnand %p660_p6, %p1018_p10 }
  0xab   : > { %p666_p8 = por %p665_p2, %p664_p5 }
  0xac   : > { %p662_p0 = pneg %p661_p12 }
  0xad   : > { %p668_p11 = por %p667_p9, %p666_p8 }
  0xaf   : > { %p669_p1 = pnand %p668_p11, %p662_p0 }
  0xb1   : > { %672 = shalt.err (!%p669_p1)
}
  0xb2   : > { %491 = dma.vmem_to_hbm [thread:$0]  (%p1018_p10), %s364_s22, 128, %s955_s17, %s350_s23  }
  0xb3 PF: > { %s375_s27 = sand.u32 1, %s724_s9   ;;  %p1019_p3 = scmp.ne.s32.totalorder %s1013_s26, 0 }
  0xb4   : > { %p1020_p7 = scmp.ge.s32.totalorder %s752_s16, 2  ;;  %s376_s21 = scalar_lea.sflag [#allocation4], %s375_s27 }
  0xb6   : > { %p501_p13 = pnand %p1020_p7, %p1019_p3 }
  0xb8   : > { %718 = dma.done.wait (!%p501_p13), %s376_s21, 128  }
  0xb9   : > { %720 = vsyncadd (!%p501_p13), %s376_s21, 4294967168  ;;  %s21_s16 = sadd.s32 1, %s752_s16   ;;  %s1021_s9 = smov %s728_s10 }
  0xba   : > { %p18_p4 = scmp.ge.s32.totalorder %s21_s16, 4   ;;  %s1022_s10 = smov %s732_s11 }
  0xbb   : > { %s1023_s11 = smov %s833_s24  ;;  %s1024_s12 = smov %s740_s13 }
  0xbc   : > { %s995_s13 = smov 0   ;;  %s1025_s14 = smov %s748_s15 }
  0xbd   : > { %s1026_s15 = smov %s1028_s19  ;;  %20 = sbr.rel (!%p18_p4) target bundleno = 9 (0x9), region = 98 }
  0xc4   :  { %381 = vsyncpa [#allocation3], 1 }
  0xc5   :  { %383 = vsyncpa [#allocation3 + $0x1], 1 }
  0xc6   :  { %384 = vsyncpa [#allocation6], 1 }
  0xc7   :  { %386 = vsyncpa [#allocation6 + $0x1], 1 }
  0xc8   :  { %387 = vsyncpa [#allocation4], 1 }
  0xc9   :  { %389 = vsyncpa [#allocation4 + $0x1], 1 }

</bundles_post_ra>
